<compile_context>
chip_gen: v5e
topology: v5e:2x2
jax: 0.10.0
libtpu: 0.0.40
codegen_flags: <defaults>
</compile_context>

<pallas_src>
import jax
import jax.numpy as jnp
from jax.experimental import pallas as pl
from jax.experimental.pallas import tpu as pltpu

D_MODEL = 768
N_ACTIONS = 2
OUT_PAD = 128      # lane-padded fused RHS width (probs: lanes 0-1, value: lane 2)
MAX_TB = 1024      # batch tile cap; fits scoped VMEM on v5e/v6e/v7x with headroom
NUM_TC = 2         # split the batch grid so v7x's two TensorCores both get work


def _round_up(x, m):
    return ((x + m - 1) // m) * m


def _actor_critic_kernel(x_ref, w_ref, b_ref, probs_ref, value_ref):
    # x_ref:     (TB, 768)  bf16 (or f32) -- CLS activations for this batch tile
    # w_ref:     (768, 128) bf16          -- [Wa^T | Wc^T | zero pad]
    # b_ref:     (1, 128)   f32           -- [ba   | bc   | zero pad]
    # probs_ref: (TB, 2)    f32           -- softmax(actor logits)
    # value_ref: (TB, 1)    f32           -- critic value
    x = x_ref[...].astype(jnp.bfloat16)            # no-op when input already bf16
    y = jnp.dot(x, w_ref[...], preferred_element_type=jnp.float32)
    y = y + b_ref[...]                             # broadcast (1,128) -> (TB,128)

    # 2-class softmax == sigmoid of the logit difference (no cross-lane reduce).
    l0 = y[:, 0:1]
    l1 = y[:, 1:2]
    p0 = pl.reciprocal(1.0 + jnp.exp(l1 - l0), approx=True)   # sigmoid(l0 - l1)
    p1 = 1.0 - p0

    lane = jax.lax.broadcasted_iota(jnp.int32, (y.shape[0], N_ACTIONS), 1)
    probs_ref[...] = jnp.where(lane == 0, p0, p1)  # (TB, 2)
    value_ref[...] = y[:, N_ACTIONS:N_ACTIONS + 1] # (TB, 1)


def prepare_params(wa, ba, wc, bc):
    """One-time fusion of the PyTorch Linear params into a lane-padded RHS + bias."""
    w = jnp.zeros((D_MODEL, OUT_PAD), jnp.float32)
    w = w.at[:, 0:N_ACTIONS].set(jnp.transpose(wa))               # (768, 2)
    w = w.at[:, N_ACTIONS:N_ACTIONS + 1].set(jnp.transpose(wc))   # (768, 1)
    b = jnp.zeros((1, OUT_PAD), jnp.float32)
    b = b.at[0, 0:N_ACTIONS].set(ba)
    b = b.at[0, N_ACTIONS].set(bc[0])
    return w.astype(jnp.bfloat16), b


def _actor_critic_xla(hidden_state, w_fused, b_fused):
    """Tiny-batch path: launch-overhead bound, let XLA fuse (ideally into the backbone)."""
    cls = hidden_state[:, 0, :].astype(jnp.bfloat16)
    y = jnp.dot(cls, w_fused, preferred_element_type=jnp.float32) + b_fused
    p0 = jax.nn.sigmoid(y[:, 0:1] - y[:, 1:2])
    probs = jnp.concatenate([p0, 1.0 - p0], axis=1)
    value = y[:, N_ACTIONS:N_ACTIONS + 1]
    return probs, value


def actor_critic_forward(hidden_state, w_fused, b_fused, *, small_batch_xla_threshold=64):
    """hidden_state: (B, S, 768) bf16 (preferred) or f32.
    Returns (action_probs (B,2) f32, state_value (B,1) f32)."""
    # TODO(synk): the external backbone `self.model(x, output_hidden_states=True)` is not
    # part of this module's parameters; its last hidden state is taken directly as input.
    B, S, D = hidden_state.shape
    assert D == D_MODEL

    if B < small_batch_xla_threshold:
        return _actor_critic_xla(hidden_state, w_fused, b_fused)

    # Free (view) reshape: the CLS token of batch row b occupies columns [0, 768)
    # of row b, so the input BlockSpec DMAs exactly the CLS rows (strided).
    x2 = hidden_state.reshape(B, S * D)

    # Tile selection: <=1024 rows, rounded to the 8-sublane grain, and split so
    # the "parallel" grid axis has >=2 steps for v7x's two TensorCores.
    if B <= 8:
        tb = B
    else:
        tb = max(8, min(MAX_TB, _round_up(pl.cdiv(B, NUM_TC), 8)))
    grid = (pl.cdiv(B, tb),)

    x_spec_kwargs = {}
    if tb >= 1024:
        # Deeper pipeline hides strided-DMA latency bubbles at tile boundaries;
        # one extra bf16 buffer (~1.5 MiB) is fine on every generation.
        x_spec_kwargs = dict(pipeline_mode=pl.Buffered(3))

    probs, value = pl.pallas_call(
        _actor_critic_kernel,
        out_shape=(jax.ShapeDtypeStruct((B, N_ACTIONS), jnp.float32),
                   jax.ShapeDtypeStruct((B, 1), jnp.float32)),
        grid=grid,
        in_specs=[
            pl.BlockSpec((tb, D_MODEL), lambda i: (i, 0), **x_spec_kwargs),  # CLS rows only
            pl.BlockSpec((D_MODEL, OUT_PAD), lambda i: (0, 0)),              # resident weights
            pl.BlockSpec((1, OUT_PAD), lambda i: (0, 0)),                    # resident bias
        ],
        out_specs=(
            pl.BlockSpec((tb, N_ACTIONS), lambda i: (i, 0)),
            pl.BlockSpec((tb, 1), lambda i: (i, 0)),
        ),
        compiler_params=pltpu.CompilerParams(
            dimension_semantics=("parallel",)),
    )(x2, w_fused, b_fused)

    return probs, value


def _init_linear(key, out_features, in_features):
    # Deterministic init mimicking nn.Linear default: U(-1/sqrt(in), 1/sqrt(in)).
    k_w, k_b = jax.random.split(key)
    bound = 1.0 / jnp.sqrt(jnp.float32(in_features))
    w = jax.random.uniform(k_w, (out_features, in_features), jnp.float32,
                           minval=-bound, maxval=bound)
    b = jax.random.uniform(k_b, (out_features,), jnp.float32,
                           minval=-bound, maxval=bound)
    return w, b


if __name__ == "__main__":
    key = jax.random.PRNGKey(0)
    k_x, k_a, k_c = jax.random.split(key, 3)

    B, S = 2, 8
    hidden_f32 = jax.random.normal(k_x, (B, S, D_MODEL), jnp.float32)
    hidden_bf16 = hidden_f32.astype(jnp.bfloat16)   # bandwidth-optimal backbone output

    wa, ba = _init_linear(k_a, N_ACTIONS, D_MODEL)   # actor: Linear(768, 2)
    wc, bc = _init_linear(k_c, 1, D_MODEL)           # critic: Linear(768, 1)
    w_fused, b_fused = prepare_params(wa, ba, wc, bc)

    # Force the Pallas path even at tiny B (production keeps the small-batch
    # XLA bypass / folds the head into the backbone epilogue).
    probs, value = actor_critic_forward(hidden_bf16, w_fused, b_fused,
                                        small_batch_xla_threshold=0)
    jax.block_until_ready((probs, value))

    # f32 hidden-state path (in-kernel bf16 cast) is also supported.
    probs32, value32 = actor_critic_forward(hidden_f32, w_fused, b_fused,
                                            small_batch_xla_threshold=0)
    jax.block_until_ready((probs32, value32))

    # Pure-JAX f32 reference of the PyTorch semantics; tolerances loosened for
    # the bf16 operands + approximate reciprocal used inside the kernel.
    cls = hidden_bf16[:, 0, :].astype(jnp.float32)
    ref_probs = jax.nn.softmax(cls @ wa.T + ba, axis=1)
    ref_value = cls @ wc.T + bc
    assert probs.shape == (B, N_ACTIONS)
    assert value.shape == (B, 1)
    assert jnp.allclose(probs, ref_probs, atol=3e-2, rtol=3e-2)
    assert jnp.allclose(value, ref_value, atol=3e-2, rtol=3e-2)
    assert jnp.allclose(jnp.sum(probs, axis=1), 1.0, atol=1e-4)
    assert jnp.allclose(probs32, probs, atol=3e-2, rtol=3e-2)
    assert jnp.allclose(value32, value, atol=3e-2, rtol=3e-2)

    print("KERNEL_OK")
</pallas_src>

<mosaic_0001>
module attributes {stable_mosaic.version = 11 : i64} {
  func.func @_actor_critic_kernel(%arg0: i32, %arg1: memref<2x768xbf16, #tpu.memory_space<vmem>>, %arg2: memref<768x128xbf16, #tpu.memory_space<vmem>>, %arg3: memref<1x128xf32, #tpu.memory_space<vmem>>, %arg4: memref<2x2xf32, #tpu.memory_space<vmem>>, %arg5: memref<2x1xf32, #tpu.memory_space<vmem>>) attributes {dimension_semantics = [#tpu.dimension_semantics<parallel>], iteration_bounds = array<i64: 1>, scalar_prefetch = 0 : i64, scratch_operands = 0 : i64, tpu.core_type = #tpu.core_type<tc>, window_params = [{transform_indices = @transform_0, window_bounds = array<i64: 2, 768>}, {pipeline_mode = #tpu.pipeline_mode<synchronous>, transform_indices = @transform_1, window_bounds = array<i64: 768, 128>}, {pipeline_mode = #tpu.pipeline_mode<synchronous>, transform_indices = @transform_2, window_bounds = array<i64: 1, 128>}, {transform_indices = @transform_3, window_bounds = array<i64: 2, 2>}, {transform_indices = @transform_4, window_bounds = array<i64: 2, 1>}]} {
    %c0 = arith.constant 0 : index
    %c0_0 = arith.constant 0 : index
    %0 = vector.load %arg1[%c0, %c0_0] : memref<2x768xbf16, #tpu.memory_space<vmem>>, vector<2x768xbf16>
    %c0_1 = arith.constant 0 : index
    %c0_2 = arith.constant 0 : index
    %1 = vector.load %arg2[%c0_1, %c0_2] : memref<768x128xbf16, #tpu.memory_space<vmem>>, vector<768x128xbf16>
    %cst = arith.constant dense<0.000000e+00> : vector<2x128xf32>
    %2 = tpu.matmul %0, %1, %cst {dimension_numbers = #tpu.dot_dimension_numbers<[1], [0], [0], [1], [0, 0, 1, 1], [], []>} : vector<2x768xbf16>, vector<768x128xbf16>, vector<2x128xf32> -> vector<2x128xf32>
    %c0_3 = arith.constant 0 : index
    %c0_4 = arith.constant 0 : index
    %3 = vector.load %arg3[%c0_3, %c0_4] : memref<1x128xf32, #tpu.memory_space<vmem>>, vector<1x128xf32>
    %4 = vector.broadcast %3 : vector<1x128xf32> to vector<2x128xf32>
    %5 = arith.addf %2, %4 : vector<2x128xf32>
    %6 = vector.extract_strided_slice %5 {offsets = [0, 0], sizes = [2, 1], strides = [1, 1]} : vector<2x128xf32> to vector<2x1xf32>
    %7 = vector.extract_strided_slice %5 {offsets = [0, 1], sizes = [2, 1], strides = [1, 1]} : vector<2x128xf32> to vector<2x1xf32>
    %8 = arith.subf %7, %6 : vector<2x1xf32>
    %9 = math.exp %8 : vector<2x1xf32>
    %cst_5 = arith.constant 1.000000e+00 : f32
    %10 = vector.broadcast %cst_5 : f32 to vector<2x1xf32>
    %11 = arith.addf %10, %9 : vector<2x1xf32>
    %12 = tpu.reciprocal %11 {approx = true} : vector<2x1xf32> -> vector<2x1xf32>
    %cst_6 = arith.constant 1.000000e+00 : f32
    %13 = vector.broadcast %cst_6 : f32 to vector<2x1xf32>
    %14 = arith.subf %13, %12 : vector<2x1xf32>
    %15 = tpu.iota {dimensions = array<i32: 1>} : vector<2x2xi32>
    %c0_i32 = arith.constant 0 : i32
    %16 = vector.broadcast %c0_i32 : i32 to vector<2x2xi32>
    %17 = arith.cmpi eq, %15, %16 : vector<2x2xi32>
    %18 = vector.shape_cast %12 : vector<2x1xf32> to vector<2x1xf32>
    %19 = vector.broadcast %18 : vector<2x1xf32> to vector<2x2xf32>
    %20 = vector.shape_cast %14 : vector<2x1xf32> to vector<2x1xf32>
    %21 = vector.broadcast %20 : vector<2x1xf32> to vector<2x2xf32>
    %22 = arith.select %17, %19, %21 : vector<2x2xi1>, vector<2x2xf32>
    %c0_7 = arith.constant 0 : index
    %c0_8 = arith.constant 0 : index
    %23 = vector.load %arg4[%c0_7, %c0_8] : memref<2x2xf32, #tpu.memory_space<vmem>>, vector<2x2xf32>
    tpu.vector_store %arg4[%c0_7, %c0_8], %22 {strides = array<i32>} : memref<2x2xf32, #tpu.memory_space<vmem>>, vector<2x2xf32>,
    %24 = vector.extract_strided_slice %5 {offsets = [0, 2], sizes = [2, 1], strides = [1, 1]} : vector<2x128xf32> to vector<2x1xf32>
    %c0_9 = arith.constant 0 : index
    %c0_10 = arith.constant 0 : index
    %25 = vector.load %arg5[%c0_9, %c0_10] : memref<2x1xf32, #tpu.memory_space<vmem>>, vector<2x1xf32>
    tpu.vector_store %arg5[%c0_9, %c0_10], %24 {strides = array<i32>} : memref<2x1xf32, #tpu.memory_space<vmem>>, vector<2x1xf32>,
    return
  }
  func.func @transform_0(%arg0: i32) -> (i32, i32) {
    %c0_i32 = arith.constant 0 : i32
    %c0_i32_0 = arith.constant 0 : i32
    return %arg0, %c0_i32 : i32, i32
  }
  func.func @transform_1(%arg0: i32) -> (i32, i32) {
    %c0_i32 = arith.constant 0 : i32
    %c0_i32_0 = arith.constant 0 : i32
    %c0_i32_1 = arith.constant 0 : i32
    return %c0_i32, %c0_i32_0 : i32, i32
  }
  func.func @transform_2(%arg0: i32) -> (i32, i32) {
    %c0_i32 = arith.constant 0 : i32
    %c0_i32_0 = arith.constant 0 : i32
    %c0_i32_1 = arith.constant 0 : i32
    return %c0_i32, %c0_i32_0 : i32, i32
  }
  func.func @transform_3(%arg0: i32) -> (i32, i32) {
    %c0_i32 = arith.constant 0 : i32
    %c0_i32_0 = arith.constant 0 : i32
    return %arg0, %c0_i32 : i32, i32
  }
  func.func @transform_4(%arg0: i32) -> (i32, i32) {
    %c0_i32 = arith.constant 0 : i32
    %c0_i32_0 = arith.constant 0 : i32
    return %arg0, %c0_i32 : i32, i32
  }
}

</mosaic_0001>

<bundles_post_ra>
// kernel: tpu_custom_call.1
= control target key start
LH: loop header
LB: loop body
LE: loop exit
PB: predicated region body
PF: predicated region fallthrough
CT: control target
= control target key end

     0   :  { %10 = vsyncpa [#allocation3], 0  ;;  %s962_s0 = inlined_call_operand.hbm [shape: bf16[2,6144], index: 0, kind: input, shape index: {}]   ;;  %s963_s1 = inlined_call_operand.hbm [shape: bf16[768,128], index: 1, kind: input, shape index: {}]   ;;  %s964_s2 = inlined_call_operand.vmem [shape: f32[1,128], index: 2, kind: input, shape index: {}]   ;;  %s965_s3 = inlined_call_operand.hbm [shape: f32[2,2], index: 3, kind: output, shape index: {0}]   ;;  %s966_s4 = inlined_call_operand.vmem [shape: f32[2,1], index: 4, kind: output, shape index: {1}]  }
   0x1   :  { %11 = vsyncpa [#allocation6], 0 }
   0x2   :  { %12 = vsyncpa [#allocation4], 0  ;;  %s18_s17 = sshll.u32 %s962_s0, 4  ;;  %s914_s18 = smov [#allocation2]   ;;  %s19_s17 = int_to_ptr.hbm [resolvable:$true] %s18_s17 }
   0x3   :  { %s20_s19 = sshll.u32 %s914_s18, 4  ;;  %s28_s22 = sshll.u32 %s963_s1, 4  ;;  %s21_s19 = int_to_ptr.vmem [resolvable:$true] %s20_s19  ;;  %s29_s22 = int_to_ptr.hbm [resolvable:$true] %s28_s22 }
   0x4   :  { %23 = dma.hbm_to_vmem [thread:$0]  %s19_s17, 96, %s21_s19, [#allocation3]  }
   0x5   :  { %s915_s23 = smov [#allocation5]   ;;  %s916_s25 = smov 64  }
   0x6   :  { %s30_s24 = sshll.u32 %s915_s23, 4  ;;  %s917_s26 = smov 4   ;;  %s31_s24 = int_to_ptr.vmem [resolvable:$true] %s30_s24 }
   0x7   :  { %36 = dma.hbm_to_vmem [thread:$0]  %s29_s22, 6144, %s31_s24, [#allocation6], %s916_s25, %s916_s25, %s917_s26  }
   0x8   :  { %908 = dma.done.wait [#allocation3], 96  }
   0x9   :  { %909 = vsyncadd [#allocation3], 4294967200 }
   0xa   :  { %910 = dma.done.wait [#allocation6], 6144  }
   0xb   :  { %911 = vsyncadd [#allocation6], 4294961152  ;;  %v780_v0 = vld [vmem:[#allocation5 + $0x38] sm:$0xff]  ;;  %v779_v2 = vld [vmem:[#allocation5 + $0x30] sm:$0xff]  ;;  %s918_s27 = smov 1   ;;  %s921_s28 = smov [#allocation7]  }
   0xc   :  { %v788_v1 = vld [vmem:[#allocation5 + $0x78] sm:$0xff]  ;;  %450 = vmatpush.bf16.msra.mxu0 %v780_v0  ;;  %v787_v3 = vld [vmem:[#allocation5 + $0x70] sm:$0xff]  ;;  %v778_v8 = vld [vmem:[#allocation5 + $0x28] sm:$0xff]  ;;  %s564_s29 = sshll.u32 %s921_s28, 4  ;;  %s566_s6 = sshll.u32 %s965_s3, 4  ;;  %vm552_vm1 = vcmask 9216   ;;  %s565_s29 = int_to_ptr.vmem [resolvable:$true] %s564_s29  ;;  %s567_s6 = int_to_ptr.hbm [resolvable:$true] %s566_s6 }
   0xd   :  { %463 = vmatpush.bf16.msra.mxu1 %v788_v1  ;;  %v796_v4 = vld [vmem:[#allocation5 + $0xb8] sm:$0xff]  ;;  %v795_v6 = vld [vmem:[#allocation5 + $0xb0] sm:$0xff]  ;;  %v786_v9 = vld [vmem:[#allocation5 + $0x68] sm:$0xff]  ;;  %vm557_vm2 = vcmask 1024  }
   0xe   :  { %v804_v5 = vld [vmem:[#allocation5 + $0xf8] sm:$0xff]  ;;  %476 = vmatpush.bf16.msra.mxu2 %v796_v4  ;;  %v803_v7 = vld [vmem:[#allocation5 + $0xf0] sm:$0xff]  ;;  %v794_v10 = vld [vmem:[#allocation5 + $0xa8] sm:$0xff] }
   0xf   :  { %489 = vmatpush.bf16.msra.mxu3 %v804_v5  ;;  %v802_v11 = vld [vmem:[#allocation5 + $0xe8] sm:$0xff]  ;;  %v777_v12 = vld [vmem:[#allocation5 + $0x20] sm:$0xff]  ;;  %v47_v14 = vld [vmem:[#allocation2] sm:$0x3f] }
  0x10   :  { %451 = vmatpush.bf16.msra.mxu0 %v779_v2  ;;  %v785_v13 = vld [vmem:[#allocation5 + $0x60] sm:$0xff]  ;;  %149 = vst [vmem:[#allocation1] ss:$9 sm:$0xff] %v47_v14  ;;  %v776_v17 = vld [vmem:[#allocation5 + $0x18] sm:$0xff]  ;;  %v775_v21 = vld [vmem:[#allocation5 + $0x10] sm:$0xff] }
  0x11   :  { %464 = vmatpush.bf16.msra.mxu1 %v787_v3  ;;  %v793_v15 = vld [vmem:[#allocation5 + $0xa0] sm:$0xff]  ;;  %v784_v18 = vld [vmem:[#allocation5 + $0x58] sm:$0xff]  ;;  %v783_v22 = vld [vmem:[#allocation5 + $0x50] sm:$0xff] }
  0x12   :  { %477 = vmatpush.bf16.msra.mxu2 %v795_v6  ;;  %v801_v16 = vld [vmem:[#allocation5 + $0xe0] sm:$0xff]  ;;  %v792_v19 = vld [vmem:[#allocation5 + $0x98] sm:$0xff]  ;;  %v791_v23 = vld [vmem:[#allocation5 + $0x90] sm:$0xff] }
  0x13   :  { %490 = vmatpush.bf16.msra.mxu3 %v803_v7  ;;  %v800_v20 = vld [vmem:[#allocation5 + $0xd8] sm:$0xff]  ;;  %v799_v24 = vld [vmem:[#allocation5 + $0xd0] sm:$0xff]  ;;  %v774_v25 = vld [vmem:[#allocation5 + $0x8] sm:$0xff] }
  0x14   :  { %452 = vmatpush.bf16.msra.mxu0 %v778_v8  ;;  %v782_v26 = vld [vmem:[#allocation5 + $0x48] sm:$0xff]  ;;  %v773_v29 = vld [vmem:[#allocation5] sm:$0xff]  ;;  %v812_v31 = vld [vmem:[#allocation5 + $0x138] sm:$0xff] }
  0x15   :  { %465 = vmatpush.bf16.msra.mxu1 %v786_v9  ;;  %v790_v27 = vld [vmem:[#allocation5 + $0x88] sm:$0xff]  ;;  %v781_v30 = vld [vmem:[#allocation5 + $0x40] sm:$0xff]  ;;  %v820_v32 = vld [vmem:[#allocation5 + $0x178] sm:$0xff] }
  0x16   :  { %478 = vmatpush.bf16.msra.mxu2 %v794_v10  ;;  %v798_v28 = vld [vmem:[#allocation5 + $0xc8] sm:$0xff]  ;;  %v789_v33 = vld [vmem:[#allocation5 + $0x80] sm:$0xff]  ;;  %v811_v37 = vld [vmem:[#allocation5 + $0x130] sm:$0xff]  ;;  %v919_v10 = vmov 1  }
  0x17   :  { %491 = vmatpush.bf16.msra.mxu3 %v802_v11  ;;  %v150_v34 = vld [vmem:[#allocation1] sm:$0xff]  ;;  %v151_v35 = vld [vmem:[#allocation1 + $0x9] sm:$0xff]  ;;  %v152_v39 = vld [vmem:[#allocation1 + $0x12] sm:$0xff]  ;;  %829 = vset.pattern.permute.xlu0 %v919_v10 }
  0x18   :  { %453 = vmatpush.bf16.msra.mxu0 %v777_v12  ;;  %v797_v36 = vld [vmem:[#allocation5 + $0xc0] sm:$0xff]  ;;  %v819_v38 = vld [vmem:[#allocation5 + $0x170] sm:$0xff]  ;;  %v810_v41 = vld [vmem:[#allocation5 + $0x128] sm:$0xff]  ;;  %830 = vset.pattern.permute.xlu1 %v919_v10 }
  0x19   :  { %466 = vmatpush.bf16.msra.mxu1 %v785_v13  ;;  %v153_v40 = vld [vmem:[#allocation1 + $0x1b] sm:$0xff]  ;;  %v809_v43 = vld [vmem:[#allocation5 + $0x120] sm:$0xff]  ;;  %v808_v45 = vld [vmem:[#allocation5 + $0x118] sm:$0xff] }
  0x1a   :  { %479 = vmatpush.bf16.msra.mxu2 %v793_v15  ;;  %v818_v42 = vld [vmem:[#allocation5 + $0x168] sm:$0xff]  ;;  %v817_v44 = vld [vmem:[#allocation5 + $0x160] sm:$0xff]  ;;  %v816_v46 = vld [vmem:[#allocation5 + $0x158] sm:$0xff] }
  0x1b   :  { %492 = vmatpush.bf16.msra.mxu3 %v801_v16  ;;  %v807_v47 = vld [vmem:[#allocation5 + $0x110] sm:$0xff]  ;;  %v806_v49 = vld [vmem:[#allocation5 + $0x108] sm:$0xff]  ;;  %v805_v51 = vld [vmem:[#allocation5 + $0x100] sm:$0xff] }
  0x1c   :  { %454 = vmatpush.bf16.msra.mxu0 %v776_v17  ;;  %v815_v48 = vld [vmem:[#allocation5 + $0x150] sm:$0xff]  ;;  %v814_v50 = vld [vmem:[#allocation5 + $0x148] sm:$0xff]  ;;  %v813_v52 = vld [vmem:[#allocation5 + $0x140] sm:$0xff] }
  0x1d   :  { %467 = vmatpush.bf16.msra.mxu1 %v784_v18  ;;  %v154_v53 = vld [vmem:[#allocation1 + $0x24] sm:$0xff]  ;;  %v155_v54 = vld [vmem:[#allocation1 + $0x2d] sm:$0xff]  ;;  %v831_v61 = vld [vmem:[%s964_s2] ss:$0 sm:$0xff]  ;;  %s920_s2 = smov 126   ;;  %v538_v18 = vlaneseq }
  0x1e   :  { %480 = vmatpush.bf16.msra.mxu2 %v792_v19 }
  0x1f   :  { %493 = vmatpush.bf16.msra.mxu3 %v800_v20  ;;  %v539_v19 = vand.u32 127, %v538_v18 }
  0x20   :  { %455 = vmatpush.bf16.msra.mxu0 %v775_v21 }
  0x21   :  { %468 = vmatpush.bf16.msra.mxu1 %v783_v22  ;;  %vm540_vm0 = vcmp.eq.s32.totalorder %v539_v19, 0 }
  0x22   :  { %481 = vmatpush.bf16.msra.mxu2 %v791_v23 }
  0x23   :  { %494 = vmatpush.bf16.msra.mxu3 %v799_v24 }
  0x24   :  { %456 = vmatpush.bf16.msra.mxu0 %v774_v25 }
  0x25   :  { %469 = vmatpush.bf16.msra.mxu1 %v782_v26 }
  0x26   :  { %482 = vmatpush.bf16.msra.mxu2 %v790_v27 }
  0x27   :  { %495 = vmatpush.bf16.msra.mxu3 %v798_v28 }
  0x28   :  { %457 = vmatpush.bf16.msra.mxu0 %v773_v29 }
  0x29   :  { %470 = vmatpush.bf16.msra.mxu1 %v781_v30 }
  0x2a   :  { %483 = vmatpush.bf16.msra.mxu2 %v789_v33 }
  0x2b   :  { %458 = vmatmul.bf16.vlgmr.msra.gmra.mxu0 %v150_v34  ;;  %496 = vmatpush.bf16.msra.mxu3 %v797_v36 }
  0x2c   :  { %502 = vmatpush.bf16.msrb.mxu0 %v812_v31  ;;  %471 = vmatmul.bf16.vlgmr.msra.gmra.mxu1 %v151_v35 }
  0x2d   :  { %515 = vmatpush.bf16.msrb.mxu1 %v820_v32  ;;  %484 = vmatmul.bf16.vlgmr.msra.gmra.mxu2 %v152_v39 }
  0x2e   :  { %497 = vmatmul.bf16.vlgmr.msra.gmra.mxu3 %v153_v40 }
  0x30   :  { %503 = vmatpush.bf16.msrb.mxu0 %v811_v37 }
  0x31   :  { %516 = vmatpush.bf16.msrb.mxu1 %v819_v38 }
  0x34   :  { %504 = vmatpush.bf16.msrb.mxu0 %v810_v41 }
  0x35   :  { %517 = vmatpush.bf16.msrb.mxu1 %v818_v42 }
  0x38   :  { %505 = vmatpush.bf16.msrb.mxu0 %v809_v43 }
  0x39   :  { %518 = vmatpush.bf16.msrb.mxu1 %v817_v44 }
  0x3c   :  { %506 = vmatpush.bf16.msrb.mxu0 %v808_v45 }
  0x3d   :  { %519 = vmatpush.bf16.msrb.mxu1 %v816_v46 }
  0x40   :  { %507 = vmatpush.bf16.msrb.mxu0 %v807_v47 }
  0x41   :  { %520 = vmatpush.bf16.msrb.mxu1 %v815_v48 }
  0x44   :  { %508 = vmatpush.bf16.msrb.mxu0 %v806_v49 }
  0x45   :  { %521 = vmatpush.bf16.msrb.mxu1 %v814_v50 }
  0x48   :  { %509 = vmatpush.bf16.msrb.mxu0 %v805_v51 }
  0x49   :  { %522 = vmatpush.bf16.msrb.mxu1 %v813_v52 }
  0x4b   :  { %510 = vmatmul.bf16.vlgmr.msrb.gmra.mxu0 %v154_v53 }
  0x4c   :  { %523 = vmatmul.bf16.vlgmr.msrb.gmra.mxu1 %v155_v54 }
  0xa8   :  { %v459_v55 = vpop.f32.mrf.mxu0 }
  0xa9   :  { %v472_v56 = vpop.f32.mrf.mxu1  ;;  %v460_v62 = vadd.f32 %v831_v61, %v459_v55 }
  0xab   :  { %v473_v1 = vadd.f32 %v472_v56, %v460_v62 }
  0xb0   :  { %v461_v57 = vpop.f32.mrf.mxu0  ;;  %v485_v59 = vpop.f32.mrf.mxu2 }
  0xb1   :  { %v474_v58 = vpop.f32.mrf.mxu1  ;;  %v498_v60 = vpop.f32.mrf.mxu3  ;;  %v486_v2 = vadd.f32 %v485_v59, %v473_v1 }
  0xb3   :  { %v499_v3 = vadd.f32 %v498_v60, %v486_v2 }
  0xb8   :  { %v487_v63 = vpop.f32.mrf.mxu2 }
  0xb9   :  { %v500_v0 = vpop.f32.mrf.mxu3 }
  0xc8   :  { %v511_v4 = vpop.f32.mrf.mxu0 }
  0xc9   :  { %v524_v5 = vpop.f32.mrf.mxu1  ;;  %v512_v6 = vadd.f32 %v511_v4, %v499_v3 }
  0xcb   :  { %v525_v7 = vadd.f32 %v524_v5, %v512_v6 }
  0xcd   :  { %529 = vrot.lane.b32.xlu0 %v525_v7, %s918_s27 }
  0xd0   :  { %v513_v8 = vpop.f32.mrf.mxu0 }
  0xd1   :  { %v526_v9 = vpop.f32.mrf.mxu1 }
 0x13f   :  { %v530_v11 = vpop.permute.xlu0 %529 }
 0x140   :  { %v532_v12 = vsub.f32 %v525_v7, %v530_v11 }
 0x142   :  { %v533_v13 = vmul.f32 1.442695, %v532_v12 }
 0x144   :  { %832 = vpow2.f32 %v533_v13 }
 0x14a   :  { %v833_v14 = vpop.eup %832 }
 0x14b   :  { %v535_v15 = vadd.f32 1.0, %v833_v14 }
 0x14d   :  { %834 = vrcp.f32 %v535_v15 }
 0x153   :  { %v835_v16 = vpop.eup %834 }
 0x154   :  { %543 = vperm.xlu0 %829, %v835_v16   ;;  %v537_v17 = vsub.f32 1.0, %v835_v16 }
 0x156   :  { %548 = vperm.xlu1 %830, %v537_v17  }
 0x15e   :  { %554 = vrot.lane.b32.xlu1 %v525_v7, %s920_s2 }
 0x1c6   :  { %v544_v20 = vpop.permute.xlu0 %543 }
 0x1c8   :  { %v549_v21 = vpop.permute.xlu1 %548 }
 0x1c9   :  { %v551_v22 = vsel %vm540_vm0, %v544_v20, %v549_v21 }
 0x1ca   :  { %553 = vst.msk [vmem:[#allocation7] sm:$0x3] %vm552_vm1, %v551_v22 }
 0x1cb   :  { %569 = dma.vmem_to_hbm [thread:$0]  %s565_s29, 32, %s567_s6, [#allocation4]  }
 0x1d0   :  { %v555_v23 = vpop.permute.xlu1 %554 }
 0x1d1   :  { %558 = vst.msk [vmem:[%s966_s4] sm:$0x3] %vm557_vm2, %v555_v23 }
 0x1d2   :  { %912 = dma.done.wait [#allocation4], 32  }
 0x1d3   :  { %913 = vsyncadd [#allocation4], 4294967264 }
 0x1d4   :  { %578 = vsyncpa [#allocation3], 1 }
 0x1d5   :  { %579 = vsyncpa [#allocation6], 1 }
 0x1d6   :  { %580 = vsyncpa [#allocation4], 1 }

</bundles_post_ra>
